<compile_context>
chip_gen: v7x
topology: tpu7x:2x2x1
jax: 0.10.0
libtpu: 0.0.40
codegen_flags: <defaults>
</compile_context>

<pallas_src>
import jax
import jax.numpy as jnp
from jax.experimental import pallas as pl
from jax.experimental.pallas import tpu as pltpu

IN_F = 1
HID = 3
OUT = 4
SUBLANE = 8
LANE = 128

# Largest lane tile we allow: 2x(in 8*tile + out 4*8*tile)*4B + temporaries
# stays comfortably under the default scoped VMEM limit on every generation
# (v7x included).
MAX_BLOCK_LANES = 32768

# Flat-packed parameter layout (22 f32 scalars in SMEM):
#   [0:3)   w1[0, j]            (stored as (in=1, out=3), i.e. PyTorch W1.T)
#   [3:6)   b1[j]
#   [6:18)  w2[j, i] row-major  (stored as (in=3, out=4), i.e. PyTorch W2.T)
#   [18:22) b2[i]
_W1_OFF = 0
_B1_OFF = HID
_W2_OFF = 2 * HID
_B2_OFF = 2 * HID + HID * OUT


def _round_up(x, m):
    return ((x + m - 1) // m) * m


def _sigmoid(z):
    # 1/(1+exp(-z)) == 0.5*(tanh(z/2)+1): one EUP push + 2 VALU ops.
    return 0.5 * (jnp.tanh(0.5 * z) + 1.0)


def generator_kernel(p_ref, x_ref, o_ref):
    """Fused MLP forward on one sublane+lane-dense batch tile.

    p_ref: (22,)           f32 in SMEM (scalar-prefetched packed params)
    x_ref: (8, TB)         f32 in VMEM (batch packed on sublanes x lanes)
    o_ref: (4, 8, TB)      f32 in VMEM (feature-major, batch packed)
    """
    x = x_ref[...]  # (8, TB) full vregs

    # Layer 1 (K = 1): per-hidden-unit broadcast FMA + sigmoid (VPU + EUP).
    h = [
        _sigmoid(p_ref[_W1_OFF + j] * x + p_ref[_B1_OFF + j])
        for j in range(HID)
    ]

    # Layer 2 (K = 3): unrolled 3-term FMA per output row + sigmoid.
    # Each row is stored directly -- no concatenate / sublane shuffle.
    for i in range(OUT):
        acc = h[0] * p_ref[_W2_OFF + 0 * OUT + i]
        acc = acc + h[1] * p_ref[_W2_OFF + 1 * OUT + i]
        acc = acc + h[2] * p_ref[_W2_OFF + 2 * OUT + i]
        o_ref[i] = _sigmoid(acc + p_ref[_B2_OFF + i])


def generator_forward(x, w1, b1, w2, b2, *, block_b=16384, torch_layout=True):
    """x: (B, 1) f32 -> (B, 4) f32, matching the PyTorch Generator forward.

    With torch_layout=False the packed (4, 8, cols) kernel output is returned
    directly (batch element b lives at [:, b // cols, b % cols]), avoiding the
    wrapper-side transpose HBM pass.
    """
    B = x.shape[0]

    # Pack the 22 parameters into one flat array (SMEM scalar prefetch).
    params = jnp.concatenate(
        [w1.reshape(-1), b1.reshape(-1), w2.reshape(-1), b2.reshape(-1)]
    ).astype(jnp.float32)

    # --- tile geometry: batch packed onto (8 sublanes) x (cols lanes) -------
    cols_min = _round_up(-(-B // SUBLANE), LANE)      # lanes per sublane row
    tile = max(LANE, min(_round_up(block_b, LANE), MAX_BLOCK_LANES, cols_min))
    # Guarantee >= 2 grid steps when there's enough work so the "parallel"
    # axis can be split across v7x's two TensorCores.
    if cols_min >= 2 * LANE and cols_min <= tile:
        tile = _round_up(-(-cols_min // 2), LANE)
    cols = _round_up(cols_min, tile)
    bp = cols * SUBLANE
    grid = (cols // tile,)

    # Lane+sublane dense layout: batch index b -> (b // cols, b % cols).
    x_flat = x.astype(jnp.float32).reshape(-1)
    if bp != B:
        x_flat = jnp.pad(x_flat, (0, bp - B))
    x_packed = x_flat.reshape(SUBLANE, cols)

    out_packed = pl.pallas_call(
        generator_kernel,
        out_shape=jax.ShapeDtypeStruct((OUT, SUBLANE, cols), jnp.float32),
        grid_spec=pltpu.PrefetchScalarGridSpec(
            num_scalar_prefetch=1,
            grid=grid,
            in_specs=[pl.BlockSpec((SUBLANE, tile), lambda b, p: (0, b))],
            out_specs=pl.BlockSpec((OUT, SUBLANE, tile), lambda b, p: (0, 0, b)),
        ),
        compiler_params=pltpu.CompilerParams(
            dimension_semantics=("parallel",),
        ),
    )(params, x_packed)

    if not torch_layout:
        return out_packed

    # Wrapper-side layout plumbing back to the PyTorch (B, 4) convention.
    # (Pure layout cost; skip it with torch_layout=False for fused consumers.)
    return out_packed.reshape(OUT, bp)[:, :B].T


def init_generator_params(key):
    """Deterministic init mimicking nn.Linear's U(-1/sqrt(fan_in), 1/sqrt(fan_in)).

    Weights are stored pre-transposed as (in_features, out_features) so that
    y = x @ W + b matches PyTorch's y = x @ W.T + b.
    """
    k1, k2, k3, k4 = jax.random.split(key, 4)
    bound1 = 1.0 / jnp.sqrt(1.0)   # fan_in = 1
    bound2 = 1.0 / jnp.sqrt(3.0)   # fan_in = 3
    w1 = jax.random.uniform(k1, (IN_F, HID), jnp.float32, -bound1, bound1)
    b1 = jax.random.uniform(k2, (1, HID), jnp.float32, -bound1, bound1)
    w2 = jax.random.uniform(k3, (HID, OUT), jnp.float32, -bound2, bound2)
    b2 = jax.random.uniform(k4, (1, OUT), jnp.float32, -bound2, bound2)
    return w1, b1, w2, b2


def reference_forward(x, w1, b1, w2, b2):
    h = jax.nn.sigmoid(x @ w1 + b1)
    return jax.nn.sigmoid(h @ w2 + b2)


if __name__ == "__main__":
    key = jax.random.PRNGKey(0)
    k_x, k_x2, k_p = jax.random.split(key, 3)

    w1, b1, w2, b2 = init_generator_params(k_p)

    # Small batch (single (8,128) tile, padded).
    batch = 8
    x = jax.random.normal(k_x, (batch, 1), dtype=jnp.float32)
    out = jax.block_until_ready(generator_forward(x, w1, b1, w2, b2))
    ref = reference_forward(x, w1, b1, w2, b2)
    assert out.shape == (batch, 4)
    assert jnp.allclose(out, ref, atol=1e-5, rtol=1e-5)

    # Larger batch exercising padding + the 2-step "parallel" grid split.
    batch2 = 3000
    x2 = jax.random.normal(k_x2, (batch2, 1), dtype=jnp.float32)
    out2 = jax.block_until_ready(generator_forward(x2, w1, b1, w2, b2))
    ref2 = reference_forward(x2, w1, b1, w2, b2)
    assert out2.shape == (batch2, 4)
    assert jnp.allclose(out2, ref2, atol=1e-5, rtol=1e-5)

    print("KERNEL_OK")
</pallas_src>

<mosaic_0001>
module attributes {stable_mosaic.version = 11 : i64} {
  func.func @generator_kernel(%arg0: i32, %arg1: memref<22xf32, #tpu.memory_space<smem>>, %arg2: memref<8x128xf32, #tpu.memory_space<vmem>>, %arg3: memref<4x8x128xf32, #tpu.memory_space<vmem>>) attributes {dimension_semantics = [#tpu.dimension_semantics<parallel>], iteration_bounds = array<i64: 1>, scalar_prefetch = 1 : i64, scratch_operands = 0 : i64, tpu.core_type = #tpu.core_type<tc>, window_params = [{transform_indices = @transform_0, window_bounds = array<i64: 8, 128>}, {transform_indices = @transform_1, window_bounds = array<i64: 4, 8, 128>}]} {
    %c0 = arith.constant 0 : index
    %c0_0 = arith.constant 0 : index
    %0 = vector.load %arg2[%c0, %c0_0] : memref<8x128xf32, #tpu.memory_space<vmem>>, vector<8x128xf32>
    %c0_1 = arith.constant 0 : index
    %1 = memref.load %arg1[%c0_1] : memref<22xf32, #tpu.memory_space<smem>>
    %2 = vector.broadcast %1 : f32 to vector<8x128xf32>
    %3 = arith.mulf %2, %0 : vector<8x128xf32>
    %c3 = arith.constant 3 : index
    %4 = memref.load %arg1[%c3] : memref<22xf32, #tpu.memory_space<smem>>
    %5 = vector.broadcast %4 : f32 to vector<8x128xf32>
    %6 = arith.addf %3, %5 : vector<8x128xf32>
    %cst = arith.constant 5.000000e-01 : f32
    %7 = vector.broadcast %cst : f32 to vector<8x128xf32>
    %8 = arith.mulf %7, %6 : vector<8x128xf32>
    %9 = math.tanh %8 : vector<8x128xf32>
    %cst_2 = arith.constant 1.000000e+00 : f32
    %10 = vector.broadcast %cst_2 : f32 to vector<8x128xf32>
    %11 = arith.addf %9, %10 : vector<8x128xf32>
    %cst_3 = arith.constant 5.000000e-01 : f32
    %12 = vector.broadcast %cst_3 : f32 to vector<8x128xf32>
    %13 = arith.mulf %12, %11 : vector<8x128xf32>
    %c1 = arith.constant 1 : index
    %14 = memref.load %arg1[%c1] : memref<22xf32, #tpu.memory_space<smem>>
    %15 = vector.broadcast %14 : f32 to vector<8x128xf32>
    %16 = arith.mulf %15, %0 : vector<8x128xf32>
    %c4 = arith.constant 4 : index
    %17 = memref.load %arg1[%c4] : memref<22xf32, #tpu.memory_space<smem>>
    %18 = vector.broadcast %17 : f32 to vector<8x128xf32>
    %19 = arith.addf %16, %18 : vector<8x128xf32>
    %cst_4 = arith.constant 5.000000e-01 : f32
    %20 = vector.broadcast %cst_4 : f32 to vector<8x128xf32>
    %21 = arith.mulf %20, %19 : vector<8x128xf32>
    %22 = math.tanh %21 : vector<8x128xf32>
    %cst_5 = arith.constant 1.000000e+00 : f32
    %23 = vector.broadcast %cst_5 : f32 to vector<8x128xf32>
    %24 = arith.addf %22, %23 : vector<8x128xf32>
    %cst_6 = arith.constant 5.000000e-01 : f32
    %25 = vector.broadcast %cst_6 : f32 to vector<8x128xf32>
    %26 = arith.mulf %25, %24 : vector<8x128xf32>
    %c2 = arith.constant 2 : index
    %27 = memref.load %arg1[%c2] : memref<22xf32, #tpu.memory_space<smem>>
    %28 = vector.broadcast %27 : f32 to vector<8x128xf32>
    %29 = arith.mulf %28, %0 : vector<8x128xf32>
    %c5 = arith.constant 5 : index
    %30 = memref.load %arg1[%c5] : memref<22xf32, #tpu.memory_space<smem>>
    %31 = vector.broadcast %30 : f32 to vector<8x128xf32>
    %32 = arith.addf %29, %31 : vector<8x128xf32>
    %cst_7 = arith.constant 5.000000e-01 : f32
    %33 = vector.broadcast %cst_7 : f32 to vector<8x128xf32>
    %34 = arith.mulf %33, %32 : vector<8x128xf32>
    %35 = math.tanh %34 : vector<8x128xf32>
    %cst_8 = arith.constant 1.000000e+00 : f32
    %36 = vector.broadcast %cst_8 : f32 to vector<8x128xf32>
    %37 = arith.addf %35, %36 : vector<8x128xf32>
    %cst_9 = arith.constant 5.000000e-01 : f32
    %38 = vector.broadcast %cst_9 : f32 to vector<8x128xf32>
    %39 = arith.mulf %38, %37 : vector<8x128xf32>
    %c6 = arith.constant 6 : index
    %40 = memref.load %arg1[%c6] : memref<22xf32, #tpu.memory_space<smem>>
    %41 = vector.broadcast %40 : f32 to vector<8x128xf32>
    %42 = arith.mulf %13, %41 : vector<8x128xf32>
    %c10 = arith.constant 10 : index
    %43 = memref.load %arg1[%c10] : memref<22xf32, #tpu.memory_space<smem>>
    %44 = vector.broadcast %43 : f32 to vector<8x128xf32>
    %45 = arith.mulf %26, %44 : vector<8x128xf32>
    %46 = arith.addf %42, %45 : vector<8x128xf32>
    %c14 = arith.constant 14 : index
    %47 = memref.load %arg1[%c14] : memref<22xf32, #tpu.memory_space<smem>>
    %48 = vector.broadcast %47 : f32 to vector<8x128xf32>
    %49 = arith.mulf %39, %48 : vector<8x128xf32>
    %50 = arith.addf %46, %49 : vector<8x128xf32>
    %c18 = arith.constant 18 : index
    %51 = memref.load %arg1[%c18] : memref<22xf32, #tpu.memory_space<smem>>
    %52 = vector.broadcast %51 : f32 to vector<8x128xf32>
    %53 = arith.addf %50, %52 : vector<8x128xf32>
    %cst_10 = arith.constant 5.000000e-01 : f32
    %54 = vector.broadcast %cst_10 : f32 to vector<8x128xf32>
    %55 = arith.mulf %54, %53 : vector<8x128xf32>
    %56 = math.tanh %55 : vector<8x128xf32>
    %cst_11 = arith.constant 1.000000e+00 : f32
    %57 = vector.broadcast %cst_11 : f32 to vector<8x128xf32>
    %58 = arith.addf %56, %57 : vector<8x128xf32>
    %cst_12 = arith.constant 5.000000e-01 : f32
    %59 = vector.broadcast %cst_12 : f32 to vector<8x128xf32>
    %60 = arith.mulf %59, %58 : vector<8x128xf32>
    %c0_13 = arith.constant 0 : index
    %c0_14 = arith.constant 0 : index
    %c0_15 = arith.constant 0 : index
    %61 = vector.load %arg3[%c0_13, %c0_14, %c0_15] : memref<4x8x128xf32, #tpu.memory_space<vmem>>, vector<1x8x128xf32>
    %62 = vector.shape_cast %61 : vector<1x8x128xf32> to vector<8x128xf32>
    %63 = vector.shape_cast %60 : vector<8x128xf32> to vector<1x8x128xf32>
    tpu.vector_store %arg3[%c0_13, %c0_14, %c0_15], %63 {strides = array<i32>} : memref<4x8x128xf32, #tpu.memory_space<vmem>>, vector<1x8x128xf32>,
    %c7 = arith.constant 7 : index
    %64 = memref.load %arg1[%c7] : memref<22xf32, #tpu.memory_space<smem>>
    %65 = vector.broadcast %64 : f32 to vector<8x128xf32>
    %66 = arith.mulf %13, %65 : vector<8x128xf32>
    %c11 = arith.constant 11 : index
    %67 = memref.load %arg1[%c11] : memref<22xf32, #tpu.memory_space<smem>>
    %68 = vector.broadcast %67 : f32 to vector<8x128xf32>
    %69 = arith.mulf %26, %68 : vector<8x128xf32>
    %70 = arith.addf %66, %69 : vector<8x128xf32>
    %c15 = arith.constant 15 : index
    %71 = memref.load %arg1[%c15] : memref<22xf32, #tpu.memory_space<smem>>
    %72 = vector.broadcast %71 : f32 to vector<8x128xf32>
    %73 = arith.mulf %39, %72 : vector<8x128xf32>
    %74 = arith.addf %70, %73 : vector<8x128xf32>
    %c19 = arith.constant 19 : index
    %75 = memref.load %arg1[%c19] : memref<22xf32, #tpu.memory_space<smem>>
    %76 = vector.broadcast %75 : f32 to vector<8x128xf32>
    %77 = arith.addf %74, %76 : vector<8x128xf32>
    %cst_16 = arith.constant 5.000000e-01 : f32
    %78 = vector.broadcast %cst_16 : f32 to vector<8x128xf32>
    %79 = arith.mulf %78, %77 : vector<8x128xf32>
    %80 = math.tanh %79 : vector<8x128xf32>
    %cst_17 = arith.constant 1.000000e+00 : f32
    %81 = vector.broadcast %cst_17 : f32 to vector<8x128xf32>
    %82 = arith.addf %80, %81 : vector<8x128xf32>
    %cst_18 = arith.constant 5.000000e-01 : f32
    %83 = vector.broadcast %cst_18 : f32 to vector<8x128xf32>
    %84 = arith.mulf %83, %82 : vector<8x128xf32>
    %c1_19 = arith.constant 1 : index
    %c0_20 = arith.constant 0 : index
    %c0_21 = arith.constant 0 : index
    %85 = vector.load %arg3[%c1_19, %c0_20, %c0_21] : memref<4x8x128xf32, #tpu.memory_space<vmem>>, vector<1x8x128xf32>
    %86 = vector.shape_cast %85 : vector<1x8x128xf32> to vector<8x128xf32>
    %87 = vector.shape_cast %84 : vector<8x128xf32> to vector<1x8x128xf32>
    tpu.vector_store %arg3[%c1_19, %c0_20, %c0_21], %87 {strides = array<i32>} : memref<4x8x128xf32, #tpu.memory_space<vmem>>, vector<1x8x128xf32>,
    %c8 = arith.constant 8 : index
    %88 = memref.load %arg1[%c8] : memref<22xf32, #tpu.memory_space<smem>>
    %89 = vector.broadcast %88 : f32 to vector<8x128xf32>
    %90 = arith.mulf %13, %89 : vector<8x128xf32>
    %c12 = arith.constant 12 : index
    %91 = memref.load %arg1[%c12] : memref<22xf32, #tpu.memory_space<smem>>
    %92 = vector.broadcast %91 : f32 to vector<8x128xf32>
    %93 = arith.mulf %26, %92 : vector<8x128xf32>
    %94 = arith.addf %90, %93 : vector<8x128xf32>
    %c16 = arith.constant 16 : index
    %95 = memref.load %arg1[%c16] : memref<22xf32, #tpu.memory_space<smem>>
    %96 = vector.broadcast %95 : f32 to vector<8x128xf32>
    %97 = arith.mulf %39, %96 : vector<8x128xf32>
    %98 = arith.addf %94, %97 : vector<8x128xf32>
    %c20 = arith.constant 20 : index
    %99 = memref.load %arg1[%c20] : memref<22xf32, #tpu.memory_space<smem>>
    %100 = vector.broadcast %99 : f32 to vector<8x128xf32>
    %101 = arith.addf %98, %100 : vector<8x128xf32>
    %cst_22 = arith.constant 5.000000e-01 : f32
    %102 = vector.broadcast %cst_22 : f32 to vector<8x128xf32>
    %103 = arith.mulf %102, %101 : vector<8x128xf32>
    %104 = math.tanh %103 : vector<8x128xf32>
    %cst_23 = arith.constant 1.000000e+00 : f32
    %105 = vector.broadcast %cst_23 : f32 to vector<8x128xf32>
    %106 = arith.addf %104, %105 : vector<8x128xf32>
    %cst_24 = arith.constant 5.000000e-01 : f32
    %107 = vector.broadcast %cst_24 : f32 to vector<8x128xf32>
    %108 = arith.mulf %107, %106 : vector<8x128xf32>
    %c2_25 = arith.constant 2 : index
    %c0_26 = arith.constant 0 : index
    %c0_27 = arith.constant 0 : index
    %109 = vector.load %arg3[%c2_25, %c0_26, %c0_27] : memref<4x8x128xf32, #tpu.memory_space<vmem>>, vector<1x8x128xf32>
    %110 = vector.shape_cast %109 : vector<1x8x128xf32> to vector<8x128xf32>
    %111 = vector.shape_cast %108 : vector<8x128xf32> to vector<1x8x128xf32>
    tpu.vector_store %arg3[%c2_25, %c0_26, %c0_27], %111 {strides = array<i32>} : memref<4x8x128xf32, #tpu.memory_space<vmem>>, vector<1x8x128xf32>,
    %c9 = arith.constant 9 : index
    %112 = memref.load %arg1[%c9] : memref<22xf32, #tpu.memory_space<smem>>
    %113 = vector.broadcast %112 : f32 to vector<8x128xf32>
    %114 = arith.mulf %13, %113 : vector<8x128xf32>
    %c13 = arith.constant 13 : index
    %115 = memref.load %arg1[%c13] : memref<22xf32, #tpu.memory_space<smem>>
    %116 = vector.broadcast %115 : f32 to vector<8x128xf32>
    %117 = arith.mulf %26, %116 : vector<8x128xf32>
    %118 = arith.addf %114, %117 : vector<8x128xf32>
    %c17 = arith.constant 17 : index
    %119 = memref.load %arg1[%c17] : memref<22xf32, #tpu.memory_space<smem>>
    %120 = vector.broadcast %119 : f32 to vector<8x128xf32>
    %121 = arith.mulf %39, %120 : vector<8x128xf32>
    %122 = arith.addf %118, %121 : vector<8x128xf32>
    %c21 = arith.constant 21 : index
    %123 = memref.load %arg1[%c21] : memref<22xf32, #tpu.memory_space<smem>>
    %124 = vector.broadcast %123 : f32 to vector<8x128xf32>
    %125 = arith.addf %122, %124 : vector<8x128xf32>
    %cst_28 = arith.constant 5.000000e-01 : f32
    %126 = vector.broadcast %cst_28 : f32 to vector<8x128xf32>
    %127 = arith.mulf %126, %125 : vector<8x128xf32>
    %128 = math.tanh %127 : vector<8x128xf32>
    %cst_29 = arith.constant 1.000000e+00 : f32
    %129 = vector.broadcast %cst_29 : f32 to vector<8x128xf32>
    %130 = arith.addf %128, %129 : vector<8x128xf32>
    %cst_30 = arith.constant 5.000000e-01 : f32
    %131 = vector.broadcast %cst_30 : f32 to vector<8x128xf32>
    %132 = arith.mulf %131, %130 : vector<8x128xf32>
    %c3_31 = arith.constant 3 : index
    %c0_32 = arith.constant 0 : index
    %c0_33 = arith.constant 0 : index
    %133 = vector.load %arg3[%c3_31, %c0_32, %c0_33] : memref<4x8x128xf32, #tpu.memory_space<vmem>>, vector<1x8x128xf32>
    %134 = vector.shape_cast %133 : vector<1x8x128xf32> to vector<8x128xf32>
    %135 = vector.shape_cast %132 : vector<8x128xf32> to vector<1x8x128xf32>
    tpu.vector_store %arg3[%c3_31, %c0_32, %c0_33], %135 {strides = array<i32>} : memref<4x8x128xf32, #tpu.memory_space<vmem>>, vector<1x8x128xf32>,
    return
  }
  func.func @transform_0(%arg0: i32, %arg1: memref<22xf32, #tpu.memory_space<smem>>) -> (i32, i32) {
    %c0_i32 = arith.constant 0 : i32
    %c0_i32_0 = arith.constant 0 : i32
    return %c0_i32, %arg0 : i32, i32
  }
  func.func @transform_1(%arg0: i32, %arg1: memref<22xf32, #tpu.memory_space<smem>>) -> (i32, i32, i32) {
    %c0_i32 = arith.constant 0 : i32
    %c0_i32_0 = arith.constant 0 : i32
    %c0_i32_1 = arith.constant 0 : i32
    return %c0_i32, %c0_i32_0, %arg0 : i32, i32, i32
  }
}

</mosaic_0001>

<bundles_post_ra>
// kernel: tpu_custom_call.1
= control target key start
LH: loop header
LB: loop body
LE: loop exit
PB: predicated region body
PF: predicated region fallthrough
CT: control target
= control target key end

     0   :  { %s357_s0 = inlined_call_operand.hbm [shape: f32[22], index: 0, kind: input, shape index: {}]   ;;  %s358_s1 = inlined_call_operand.hbm [shape: f32[8,128], index: 1, kind: input, shape index: {}]   ;;  %s359_s2 = inlined_call_operand.hbm [shape: f32[4,8,128], index: 2, kind: output, shape index: {}]  }
   0x1   :  { %s193_s11 = scalar_lea.hbm %s357_s0, 16 }
   0x2   :  { %p194_p0 = scmp.ne.s32.totalorder %s357_s0, %s193_s11  ;;  %p197_p1 = scmp.lt.u32.totalorder %s193_s11, %s357_s0 }
   0x4   :  { %p199_p2 = pnand %p197_p1, %p194_p0 }
   0x6   :  { %202 = shalt.err (!%p199_p2)  }
   0x7   :  { %s253_s16 = smov [#allocation3]  }
   0x8   :  { %8 = dma.hbm_to_smem %s357_s0, 16, %s253_s16, [#allocation2] }
   0x9   :  { %247 = dma.done.wait [#allocation2], 16 }
   0xa   :  { %248 = vsyncadd [#allocation2], 4294967280 }
   0xb   :  { %10 = sfence }
   0xc   :  { %11 = vsyncpa [#allocation5], 0 }
   0xd   :  { %12 = vsyncpa [#allocation6], 0  ;;  %s254_s19 = smov [#allocation4]   ;;  %s203_s23 = scalar_lea.hbm %s358_s1, 128 }
   0xe   :  { %s19_s20 = sshll.u32 %s254_s19, 4  ;;  %p204_p3 = scmp.ne.s32.totalorder %s358_s1, %s203_s23  ;;  %s20_s20 = int_to_ptr.vmem [resolvable:$true] %s19_s20 }
   0xf   :  { %p207_p4 = scmp.lt.u32.totalorder %s203_s23, %s358_s1 }
  0x11   :  { %p209_p5 = pnand %p207_p4, %p204_p3 }
  0x13   :  { %212 = shalt.err (!%p209_p5)
}
  0x14   :  { %s213_s0 = scalar_lea.vmem %s20_s20, 128  ;;  %p218_p7 = scmp.lt.s32.totalorder %s20_s20, %s20_s20 }
  0x15   :  { %p214_p6 = scmp.ne.s32.totalorder %s20_s20, %s213_s0  ;;  %p219_p8 = scmp.lt.s32.totalorder %s213_s0, %s213_s0 }
  0x17   :  { %p220_p9 = por %p219_p8, %p218_p7 }
  0x19   :  { %p221_p10 = pnand %p220_p9, %p214_p6 }
  0x1b   :  { %224 = shalt.err (!%p221_p10)
}
  0x1c   :  { %22 = dma.hbm_to_vmem [thread:$0]  %s358_s1, 128, %s20_s20, [#allocation5]  }
  0x1d   :  { %249 = dma.done.wait [#allocation5], 128  }
  0x1e   :  { %250 = vsyncadd [#allocation5], 4294967168  ;;  %s27_s30 = sld [smem:[#allocation3]]  ;;  %s153_s3 = sld [smem:[#allocation3 + $0x3]]  ;;  %v26_v0 = vld [vmem:[#allocation4] sm:$0xff] }
  0x1f   :  { %s154_s4 = sld [smem:[#allocation3 + $0x1]]  ;;  %s155_s5 = sld [smem:[#allocation3 + $0x4]] }
  0x20   :  { %s156_s6 = sld [smem:[#allocation3 + $0x2]]  ;;  %s157_s7 = sld [smem:[#allocation3 + $0x5]] }
  0x21   :  { %s297_s1 = sld [smem:[#allocation3 + $0x6]]  ;;  %s299_s8 = sld [smem:[#allocation3 + $0xa]] }
  0x22   :  { %s301_s9 = sld [smem:[#allocation3 + $0xe]]  ;;  %s303_s10 = sld [smem:[#allocation3 + $0x7]] }
  0x23   :  { %s305_s11 = sld [smem:[#allocation3 + $0xb]]  ;;  %s307_s12 = sld [smem:[#allocation3 + $0xf]] }
  0x24   :  { %v28_v1 = vstv %s27_s30  ;;  %v31_v2 = vstv %s153_s3  ;;  %s309_s13 = sld [smem:[#allocation3 + $0x8]]  ;;  %s311_s14 = sld [smem:[#allocation3 + $0xc]] }
  0x25   :  { %v29_v3 = vmul.f32 %v28_v1, %v26_v0  ;;  %v38_v4 = vstv %s154_s4  ;;  %v41_v5 = vstv %s155_s5  ;;  %s313_s15 = sld [smem:[#allocation3 + $0x10]]  ;;  %s315_s16 = sld [smem:[#allocation3 + $0x9]] }
  0x26   :  { %v39_v6 = vmul.f32 %v38_v4, %v26_v0  ;;  %v48_v7 = vstv %s156_s6  ;;  %v51_v8 = vstv %s157_s7  ;;  %s317_s17 = sld [smem:[#allocation3 + $0xd]]  ;;  %s319_s18 = sld [smem:[#allocation3 + $0x11]] }
  0x27   :  { %v32_v9 = vadd.f32 %v31_v2, %v29_v3  ;;  %v49_v10 = vmul.f32 %v48_v7, %v26_v0  ;;  %v58_v17 = vstv %s297_s1  ;;  %s322_s19 = sld [smem:[#allocation3 + $0x12]]  ;;  %v61_v20 = vstv %s299_s8  ;;  %s327_s20 = sld [smem:[#allocation3 + $0x13]] }
  0x28   :  { %v42_v11 = vadd.f32 %v41_v5, %v39_v6  ;;  %v65_v21 = vstv %s301_s9  ;;  %v77_v22 = vstv %s303_s10  ;;  %s329_s21 = sld [smem:[#allocation3 + $0x14]]  ;;  %s334_s22 = sld [smem:[#allocation3 + $0x15]] }
  0x29   :  { %v33_v12 = vmul.f32 0.5, %v32_v9  ;;  %v52_v13 = vadd.f32 %v51_v8, %v49_v10  ;;  %v80_v25 = vstv %s305_s11  ;;  %v84_v26 = vstv %s307_s12  ;;  %s255_s23 = smov [#allocation7]  }
  0x2a   :  { %v43_v14 = vmul.f32 0.5, %v42_v11  ;;  %v97_v27 = vstv %s309_s13  ;;  %v100_v30 = vstv %s311_s14  ;;  %s141_s24 = sshll.u32 %s255_s23, 4  ;;  %s142_s24 = int_to_ptr.vmem [resolvable:$true] %s141_s24 }
  0x2b   :  { %179 = vtanh.f32 %v33_v12  ;;  %v53_v15 = vmul.f32 0.5, %v52_v13  ;;  %v117_v31 = vstv %s315_s16  ;;  %v104_v33 = vstv %s313_s15  ;;  %s225_s25 = scalar_lea.vmem %s142_s24, 512  ;;  %p230_p12 = scmp.lt.s32.totalorder %s142_s24, %s142_s24 }
  0x2c   :  { %181 = vtanh.f32 %v43_v14  ;;  %v120_v34 = vstv %s317_s17  ;;  %v124_v35 = vstv %s319_s18  ;;  %p226_p11 = scmp.ne.s32.totalorder %s142_s24, %s225_s25  ;;  %p231_p13 = scmp.lt.s32.totalorder %s225_s25, %s225_s25 }
  0x2d   :  { %183 = vtanh.f32 %v53_v15  ;;  %v69_v52 = vstv %s322_s19  ;;  %v88_v53 = vstv %s327_s20 }
  0x2e   :  { %v108_v54 = vstv %s329_s21  ;;  %v128_v59 = vstv %s334_s22  ;;  %p232_p0 = por %p231_p13, %p230_p12 }
  0x30   :  { %p233_p1 = pnand %p232_p0, %p226_p11 }
  0x35   :  { %v180_v16 = vpop.eup %179 }
  0x36   :  { %v182_v18 = vpop.eup %181  ;;  %v35_v19 = vadd.f32 1.0, %v180_v16 }
  0x37   :  { %v184_v23 = vpop.eup %183  ;;  %v45_v24 = vadd.f32 1.0, %v182_v18 }
  0x38   :  { %v36_v28 = vmul.f32 0.5, %v35_v19  ;;  %v55_v29 = vadd.f32 1.0, %v184_v23 }
  0x39   :  { %v46_v32 = vmul.f32 0.5, %v45_v24 }
  0x3a   :  { %v56_v36 = vmul.f32 0.5, %v55_v29  ;;  %v59_v37 = vmul.f32 %v58_v17, %v36_v28  ;;  %v78_v38 = vmul.f32 %v77_v22, %v36_v28  ;;  %v98_v39 = vmul.f32 %v97_v27, %v36_v28 }
  0x3b   :  { %v62_v40 = vmul.f32 %v61_v20, %v46_v32  ;;  %v81_v41 = vmul.f32 %v80_v25, %v46_v32  ;;  %v101_v42 = vmul.f32 %v100_v30, %v46_v32  ;;  %v118_v43 = vmul.f32 %v117_v31, %v36_v28 }
  0x3c   :  { %v66_v44 = vmul.f32 %v65_v21, %v56_v36  ;;  %v85_v45 = vmul.f32 %v84_v26, %v56_v36  ;;  %v105_v46 = vmul.f32 %v104_v33, %v56_v36  ;;  %v121_v47 = vmul.f32 %v120_v34, %v46_v32 }
  0x3d   :  { %v63_v48 = vadd.f32 %v62_v40, %v59_v37  ;;  %v82_v49 = vadd.f32 %v81_v41, %v78_v38  ;;  %v102_v50 = vadd.f32 %v101_v42, %v98_v39  ;;  %v125_v51 = vmul.f32 %v124_v35, %v56_v36 }
  0x3e   :  { %v122_v55 = vadd.f32 %v121_v47, %v118_v43 }
  0x3f   :  { %v67_v56 = vadd.f32 %v66_v44, %v63_v48  ;;  %v86_v57 = vadd.f32 %v85_v45, %v82_v49  ;;  %v106_v58 = vadd.f32 %v105_v46, %v102_v50 }
  0x40   :  { %v126_v60 = vadd.f32 %v125_v51, %v122_v55 }
  0x41   :  { %v70_v61 = vadd.f32 %v69_v52, %v67_v56  ;;  %v89_v62 = vadd.f32 %v88_v53, %v86_v57  ;;  %v109_v63 = vadd.f32 %v108_v54, %v106_v58 }
  0x42   :  { %v129_v0 = vadd.f32 %v128_v59, %v126_v60 }
  0x43   :  { %v71_v1 = vmul.f32 0.5, %v70_v61  ;;  %v90_v2 = vmul.f32 0.5, %v89_v62  ;;  %v110_v3 = vmul.f32 0.5, %v109_v63 }
  0x44   :  { %v130_v4 = vmul.f32 0.5, %v129_v0 }
  0x45   :  { %185 = vtanh.f32 %v71_v1 }
  0x46   :  { %187 = vtanh.f32 %v90_v2 }
  0x47   :  { %189 = vtanh.f32 %v110_v3 }
  0x48   :  { %191 = vtanh.f32 %v130_v4 }
  0x4f   :  { %v186_v5 = vpop.eup %185 }
  0x50   :  { %v188_v6 = vpop.eup %187  ;;  %v73_v7 = vadd.f32 1.0, %v186_v5 }
  0x51   :  { %v190_v8 = vpop.eup %189  ;;  %v92_v9 = vadd.f32 1.0, %v188_v6 }
  0x52   :  { %v192_v10 = vpop.eup %191  ;;  %v74_v11 = vmul.f32 0.5, %v73_v7  ;;  %v112_v12 = vadd.f32 1.0, %v190_v8 }
  0x53   :  { %v93_v13 = vmul.f32 0.5, %v92_v9  ;;  %v132_v14 = vadd.f32 1.0, %v192_v10 }
  0x54   :  { %75 = vst [vmem:[#allocation7] sm:$0xff] %v74_v11  ;;  %v113_v15 = vmul.f32 0.5, %v112_v12 }
  0x55   :  { %95 = vst [vmem:[#allocation7 + $0x8] sm:$0xff] %v93_v13  ;;  %v133_v16 = vmul.f32 0.5, %v132_v14 }
  0x56   :  { %115 = vst [vmem:[#allocation7 + $0x10] sm:$0xff] %v113_v15 }
  0x57   :  { %135 = vst [vmem:[#allocation7 + $0x18] sm:$0xff] %v133_v16 }
  0x58   :  { %236 = shalt.err (!%p233_p1)
}
  0x59   :  { %s237_s0 = scalar_lea.hbm %s359_s2, 512 }
  0x5a   :  { %p238_p2 = scmp.ne.s32.totalorder %s359_s2, %s237_s0  ;;  %p241_p3 = scmp.lt.u32.totalorder %s237_s0, %s359_s2 }
  0x5c   :  { %p243_p4 = pnand %p241_p3, %p238_p2 }
  0x5e   :  { %246 = shalt.err (!%p243_p4)
}
  0x5f   :  { %s256_s4 = smov 128   ;;  %s257_s5 = smov 8  }
  0x60   :  { %147 = dma.vmem_to_hbm [thread:$0]  %s142_s24, 512, %s359_s2, [#allocation6], %s256_s4, %s256_s4, %s257_s5  }
  0x61   :  { %251 = dma.done.wait [#allocation6], 512  }
  0x62   :  { %252 = vsyncadd [#allocation6], 4294966784 }
  0x63   :  { %151 = vsyncpa [#allocation5], 1 }
  0x64   :  { %152 = vsyncpa [#allocation6], 1 }

</bundles_post_ra>
